<compile_context>
chip_gen: v6e
topology: v6e:2x2x1
jax: 0.10.0
libtpu: 0.0.40
codegen_flags: <defaults>
</compile_context>

<pallas_src>
import math
import functools

import jax
import jax.numpy as jnp
from jax import lax
from jax.experimental import pallas as pl
from jax.experimental.pallas import tpu as pltpu


def _round_up(x, m):
    return ((x + m - 1) // m) * m


def _gpt_kernel(n_head, use_bf16,
                x_ref, mask_ref, avg_ref,
                wqkv_ref, projw_ref, fcw_ref, mprojw_ref,
                bias_ref, ln_ref, headw_ref, headb_ref,
                out_ref):
    E = x_ref.shape[0]          # n_embd (sublane dim)
    R = x_ref.shape[1]          # batch_block * T (lane dim)
    hd = E // n_head
    scale = 1.0 / math.sqrt(hd)
    f32 = jnp.float32
    mm_dtype = jnp.bfloat16 if use_bf16 else jnp.float32

    def mm(a, b):               # standard matmul, f32 accumulate
        return jnp.dot(a.astype(mm_dtype), b.astype(mm_dtype),
                       preferred_element_type=f32)

    def mm_tb(a, b):            # contract last dims of both (a @ b.T form)
        return lax.dot_general(a.astype(mm_dtype), b.astype(mm_dtype),
                               (((1,), (1,)), ((), ())),
                               preferred_element_type=f32)

    ln = ln_ref[...]            # (E, 6): ln1_w, ln1_b, ln2_w, ln2_b, lnf_w, lnf_b
    bias = bias_ref[...]        # (7E, 1): qkv_b(3E), proj_b(E), mproj_b(E), fc_b(2E)
    b_qkv = bias[0:3 * E]
    b_proj = bias[3 * E:4 * E]
    b_mprj = bias[4 * E:5 * E]
    b_fc = bias[5 * E:7 * E]

    def layer_norm(x, col, eps=1e-5):          # x: (E, R); params are columns of ln
        mu = jnp.mean(x, axis=0, keepdims=True)
        var = jnp.mean((x - mu) ** 2, axis=0, keepdims=True)
        return (x - mu) * lax.rsqrt(var + eps) * ln[:, col:col + 1] + ln[:, col + 1:col + 2]

    # token + pos + cls embeddings arrive pre-added and pre-transposed: (E, R)
    # TODO(synk): embd/attn/resid nn.Dropout are stochastic in train mode;
    # implemented as identity (eval semantics).
    h = x_ref[...]

    # ---- Block (n_layer = 1): x = relu(x); x = block(x) ----
    h = jnp.maximum(h, 0.0)

    # ln_1 + fused qkv projection (single (3E,E)@(E,R) MXU pass), relu'd
    a_in = layer_norm(h, 0)
    qkv = jnp.maximum(mm(wqkv_ref[...], a_in) + b_qkv, 0.0)       # (3E, R) f32
    kv_c = qkv[E:].astype(mm_dtype)                               # hoisted cast (k, v)

    mask = mask_ref[...]        # (R, R) block-diagonal causal 0/1 (f32)
    y = jnp.zeros((E, R), f32)
    for hh in range(n_head):    # static head loop (n_head = 2)
        q_h = qkv[hh * hd:(hh + 1) * hd]                          # (hd, R) f32
        k_h = kv_c[hh * hd:(hh + 1) * hd]                         # (hd, R)
        v_h = kv_c[E + hh * hd:E + (hh + 1) * hd]                 # (hd, R)
        # scores: q^T @ k (small f32 XLU transpose, then standard MXU matmul)
        att = mm(q_h.T, k_h) * scale                              # (R, R)
        # masked_fill(-inf) + relu == relu(att) * {0,1} mask: exact zeros, so
        # samples in the same batch block never mix.
        att = jnp.maximum(att, 0.0) * mask
        yh = mm_tb(v_h, att)                                      # (hd, R)
        # output projection folded per head: no head concatenate needed
        y = y + mm(projw_ref[hh], yh)                             # (E, hd)@(hd, R)
    h = h + y + b_proj

    # ln_2 + MLP (ReLU activation, 2x hidden)
    m_in = layer_norm(h, 2)
    mid = jnp.maximum(mm(fcw_ref[...], m_in) + b_fc, 0.0)         # (2E, R)
    h = h + mm(mprojw_ref[...], mid) + b_mprj

    # ---- head ----
    h = jnp.maximum(h, 0.0)
    h = layer_norm(h, 4)
    h = jnp.maximum(h, 0.0)                                       # h >= 0
    # mean over T as one MXU matmul with the resident averaging matrix
    emb = lax.dot_general(avg_ref[...], h, (((1,), (1,)), ((), ())),
                          preferred_element_type=f32)             # (B_blk, E), >= 0
    # lm_head augmented with identity columns: logits land in lanes [0:M] and
    # emb is echoed (exactly, since emb >= 0 so relu is the identity on it)
    # into lanes [emb_col:emb_col+E].  One lane-dense 256-wide store.
    out = jnp.dot(emb, headw_ref[...], preferred_element_type=f32) + headb_ref[...]
    out_ref[...] = jnp.maximum(out, 0.0)


def gpt_forward(X, Y, params, n_head, *, batch_block=None, use_bf16_matmul=True):
    """Replicates GPT.forward(X, Y) -> (emb1, emb2, loss, loss1, loss3, mod_logits).

    Weights use torch nn.Linear (out_features, in_features) convention.
    Requires vocab_size == n_embd (the reference adds raw X to the embeddings)
    and T == block_size (cls-embedding broadcast).
    """
    B, T, E = X.shape
    hd = E // n_head
    M = params["head_w"].shape[0]
    M_pad = _round_up(M + E, 128)       # spare lanes at the end hold the emb echo
    emb_col = M_pad - E

    # ---- batch blocking ----------------------------------------------------
    if batch_block is None:
        if B * T <= 256:
            # tiny batch: one grid step over the real batch, no padding waste
            batch_block = B
        else:
            # alignment so blocks satisfy (8,128) tiling when grid > 1:
            #   batch_block % 8 == 0  and  (batch_block * T) % 128 == 0
            a = 128 // math.gcd(T, 128)
            align = a * 8 // math.gcd(a, 8)
            batch_block = max(align, (max(1, 256 // T) // align) * align)  # R ~= 256
            # prefer >= 2 grid steps so v7x's second TensorCore has work
            while batch_block > align and pl.cdiv(B, batch_block) < 2:
                batch_block -= align
    B_pad = pl.cdiv(B, batch_block) * batch_block
    R = batch_block * T

    # ---- host-side glue: embeddings, transpose, resident constants --------
    wpe = params["wpe"]
    num_cls = T // 2
    cls_ids = jnp.concatenate(
        [jnp.zeros((num_cls,), jnp.int32), jnp.ones((num_cls,), jnp.int32)])
    poscls = wpe[jnp.arange(T)] + wpe[cls_ids]                     # (T, E)

    Xp = X.astype(jnp.float32) + poscls[None]                      # (B, T, E)
    if B_pad != B:
        Xp = jnp.pad(Xp, ((0, B_pad - B), (0, 0), (0, 0)))
    x_t = Xp.reshape(B_pad * T, E).T                               # (E, B_pad*T)

    rows = jnp.arange(R)
    mask = (((rows[:, None] // T) == (rows[None, :] // T))
            & (rows[:, None] >= rows[None, :])).astype(jnp.float32)        # (R, R)
    avg_t = ((rows[None, :] // T) == jnp.arange(batch_block)[:, None]
             ).astype(jnp.float32) / T                                      # (B_blk, R)

    # ---- pack the small parameters into a few lane/sublane-aligned arrays --
    w_dtype = jnp.bfloat16 if use_bf16_matmul else jnp.float32
    wqkv = params["attn_w"].astype(w_dtype)                        # (3E, E)
    projw_heads = jnp.stack(
        [params["proj_w"][:, h * hd:(h + 1) * hd] for h in range(n_head)],
        axis=0).astype(w_dtype)                                    # (n_head, E, hd)
    fc_w = params["fc_w"].astype(w_dtype)                          # (2E, E)
    mproj_w = params["mproj_w"].astype(w_dtype)                    # (E, 2E)

    bias_pack = jnp.concatenate(
        [params["attn_b"], params["proj_b"], params["mproj_b"], params["fc_b"]]
    ).astype(jnp.float32).reshape(7 * E, 1)                        # (7E, 1)
    ln_pack = jnp.stack(
        [params["ln1_w"], params["ln1_b"], params["ln2_w"], params["ln2_b"],
         params["lnf_w"], params["lnf_b"]], axis=1).astype(jnp.float32)      # (E, 6)

    head_w_aug = jnp.concatenate(
        [params["head_w"].T.astype(jnp.float32),                   # (E, M)
         jnp.zeros((E, emb_col - M), jnp.float32),
         jnp.eye(E, dtype=jnp.float32)], axis=1)                   # (E, M_pad)
    head_b_aug = jnp.concatenate(
        [params["head_b"].astype(jnp.float32),
         jnp.zeros((M_pad - M,), jnp.float32)]).reshape(1, M_pad)  # (1, M_pad)

    def resident(shape):
        return pl.BlockSpec(shape, lambda b, _n=len(shape): (0,) * _n)

    out = pl.pallas_call(
        functools.partial(_gpt_kernel, n_head, use_bf16_matmul),
        grid=(B_pad // batch_block,),
        in_specs=[
            pl.BlockSpec((E, R), lambda b: (0, b)),   # x_t: 2-D column slab per step
            resident((R, R)),                         # block-diag causal mask
            resident((batch_block, R)),               # mean-over-T matrix
            resident((3 * E, E)),                     # fused c_attn weight
            resident((n_head, E, hd)),                # c_proj weight, per-head slices
            resident((2 * E, E)),                     # mlp c_fc weight
            resident((E, 2 * E)),                     # mlp c_proj weight
            resident((7 * E, 1)),                     # packed biases
            resident((E, 6)),                         # packed LayerNorm params
            resident((E, M_pad)),                     # lm_head (+ identity emb echo)
            resident((1, M_pad)),                     # lm_head bias (padded)
        ],
        out_specs=pl.BlockSpec((batch_block, M_pad), lambda b: (b, 0)),
        out_shape=jax.ShapeDtypeStruct((B_pad, M_pad), jnp.float32),
        compiler_params=pltpu.CompilerParams(
            dimension_semantics=("parallel",)),       # v7x: shard batch over both TCs
    )(x_t, mask, avg_t, wqkv, projw_heads, fc_w, mproj_w,
      bias_pack, ln_pack, head_w_aug, head_b_aug)

    mod_logits = out[:B, :M]                          # (B, M)
    emb = out[:B, emb_col:emb_col + E]                # (B, E), exact echo (emb >= 0)

    # final scalar losses (tiny; plain-JAX glue)
    loss1 = jnp.sqrt(jnp.mean((mod_logits - Y) ** 2))  # F.mse_loss ** 0.5
    emb1 = emb[:, :E // 2]
    emb2 = emb[:, E // 2:]
    loss3 = jnp.sqrt(jnp.mean((emb1 - emb2) ** 2))
    loss = 50.0 * loss1 + loss3                        # config.loss1 = 50
    return emb1, emb2, loss, loss1, loss3, mod_logits


def init_params(key, n_embd, block_size, mod2_dim, n_layer=1):
    """Deterministic init mirroring GPT._init_weights (std=0.02, zero biases,
    unit LayerNorm, c_proj std = 0.02/sqrt(2*n_layer)).  Torch (out,in) layout."""
    E = n_embd
    std = 0.02
    cproj_std = 0.02 / math.sqrt(2 * n_layer)
    ks = jax.random.split(key, 6)
    f32 = jnp.float32
    return dict(
        wpe=std * jax.random.normal(ks[0], (block_size, E), f32),
        ln1_w=jnp.ones((E,), f32), ln1_b=jnp.zeros((E,), f32),
        attn_w=std * jax.random.normal(ks[1], (3 * E, E), f32),
        attn_b=jnp.zeros((3 * E,), f32),
        proj_w=cproj_std * jax.random.normal(ks[2], (E, E), f32),
        proj_b=jnp.zeros((E,), f32),
        ln2_w=jnp.ones((E,), f32), ln2_b=jnp.zeros((E,), f32),
        fc_w=std * jax.random.normal(ks[3], (2 * E, E), f32),
        fc_b=jnp.zeros((2 * E,), f32),
        mproj_w=cproj_std * jax.random.normal(ks[4], (E, 2 * E), f32),
        mproj_b=jnp.zeros((E,), f32),
        lnf_w=jnp.ones((E,), f32), lnf_b=jnp.zeros((E,), f32),
        head_w=std * jax.random.normal(ks[5], (mod2_dim, E), f32),
        head_b=jnp.zeros((mod2_dim,), f32),
    )


if __name__ == "__main__":
    # gpt-nano: n_layer=1, n_head=config.h=2; vocab_size must equal n_embd
    # because cross_mod adds the raw input to the (T, n_embd) embeddings.
    B = 2
    block_size = 8          # T == block_size (cls embedding broadcast requires it)
    n_embd = 32
    n_head = 2
    vocab_size = n_embd
    mod2_dim = 134          # default config

    key = jax.random.PRNGKey(0)
    kx, ky, kp = jax.random.split(key, 3)
    X = jax.random.normal(kx, (B, block_size, vocab_size), jnp.float32)
    Y = jax.random.normal(ky, (B, mod2_dim), jnp.float32)
    params = init_params(kp, n_embd, block_size, mod2_dim, n_layer=1)

    outs = gpt_forward(X, Y, params, n_head)
    outs = jax.block_until_ready(outs)

    emb1, emb2, loss, loss1, loss3, mod1_logits2 = outs
    assert emb1.shape == (B, n_embd // 2)
    assert emb2.shape == (B, n_embd // 2)
    assert mod1_logits2.shape == (B, mod2_dim)
    assert loss.shape == () and loss1.shape == () and loss3.shape == ()
    assert bool(jnp.isfinite(loss))
    print("KERNEL_OK")
</pallas_src>

<mosaic_0001>
module attributes {stable_mosaic.version = 11 : i64} {
  func.func @_gpt_kernel(%arg0: i32, %arg1: memref<32x16xf32, #tpu.memory_space<vmem>>, %arg2: memref<16x16xf32, #tpu.memory_space<vmem>>, %arg3: memref<2x16xf32, #tpu.memory_space<vmem>>, %arg4: memref<96x32xbf16, #tpu.memory_space<vmem>>, %arg5: memref<2x32x16xbf16, #tpu.memory_space<vmem>>, %arg6: memref<64x32xbf16, #tpu.memory_space<vmem>>, %arg7: memref<32x64xbf16, #tpu.memory_space<vmem>>, %arg8: memref<224x1xf32, #tpu.memory_space<vmem>>, %arg9: memref<32x6xf32, #tpu.memory_space<vmem>>, %arg10: memref<32x256xf32, #tpu.memory_space<vmem>>, %arg11: memref<1x256xf32, #tpu.memory_space<vmem>>, %arg12: memref<2x256xf32, #tpu.memory_space<vmem>>) attributes {dimension_semantics = [#tpu.dimension_semantics<parallel>], iteration_bounds = array<i64: 1>, scalar_prefetch = 0 : i64, scratch_operands = 0 : i64, tpu.core_type = #tpu.core_type<tc>, window_params = [{transform_indices = @transform_0, window_bounds = array<i64: 32, 16>}, {pipeline_mode = #tpu.pipeline_mode<synchronous>, transform_indices = @transform_1, window_bounds = array<i64: 16, 16>}, {pipeline_mode = #tpu.pipeline_mode<synchronous>, transform_indices = @transform_2, window_bounds = array<i64: 2, 16>}, {pipeline_mode = #tpu.pipeline_mode<synchronous>, transform_indices = @transform_3, window_bounds = array<i64: 96, 32>}, {pipeline_mode = #tpu.pipeline_mode<synchronous>, transform_indices = @transform_4, window_bounds = array<i64: 2, 32, 16>}, {pipeline_mode = #tpu.pipeline_mode<synchronous>, transform_indices = @transform_5, window_bounds = array<i64: 64, 32>}, {pipeline_mode = #tpu.pipeline_mode<synchronous>, transform_indices = @transform_6, window_bounds = array<i64: 32, 64>}, {pipeline_mode = #tpu.pipeline_mode<synchronous>, transform_indices = @transform_7, window_bounds = array<i64: 224, 1>}, {pipeline_mode = #tpu.pipeline_mode<synchronous>, transform_indices = @transform_8, window_bounds = array<i64: 32, 6>}, {pipeline_mode = #tpu.pipeline_mode<synchronous>, transform_indices = @transform_9, window_bounds = array<i64: 32, 256>}, {pipeline_mode = #tpu.pipeline_mode<synchronous>, transform_indices = @transform_10, window_bounds = array<i64: 1, 256>}, {transform_indices = @transform_11, window_bounds = array<i64: 2, 256>}]} {
    %c0 = arith.constant 0 : index
    %c0_0 = arith.constant 0 : index
    %0 = vector.load %arg9[%c0, %c0_0] : memref<32x6xf32, #tpu.memory_space<vmem>>, vector<32x6xf32>
    %c0_1 = arith.constant 0 : index
    %c0_2 = arith.constant 0 : index
    %1 = vector.load %arg8[%c0_1, %c0_2] : memref<224x1xf32, #tpu.memory_space<vmem>>, vector<224x1xf32>
    %2 = vector.extract_strided_slice %1 {offsets = [0, 0], sizes = [96, 1], strides = [1, 1]} : vector<224x1xf32> to vector<96x1xf32>
    %3 = vector.extract_strided_slice %1 {offsets = [96, 0], sizes = [32, 1], strides = [1, 1]} : vector<224x1xf32> to vector<32x1xf32>
    %4 = vector.extract_strided_slice %1 {offsets = [128, 0], sizes = [32, 1], strides = [1, 1]} : vector<224x1xf32> to vector<32x1xf32>
    %5 = vector.extract_strided_slice %1 {offsets = [160, 0], sizes = [64, 1], strides = [1, 1]} : vector<224x1xf32> to vector<64x1xf32>
    %c0_3 = arith.constant 0 : index
    %c0_4 = arith.constant 0 : index
    %6 = vector.load %arg1[%c0_3, %c0_4] : memref<32x16xf32, #tpu.memory_space<vmem>>, vector<32x16xf32>
    %cst = arith.constant 0.000000e+00 : f32
    %7 = vector.broadcast %cst : f32 to vector<32x16xf32>
    %8 = arith.maximumf %6, %7 : vector<32x16xf32>
    %cst_5 = arith.constant dense<0.000000e+00> : vector<16xf32>
    %9 = vector.multi_reduction <add>, %8, %cst_5 [0] : vector<32x16xf32> to vector<16xf32>
    %10 = vector.shape_cast %9 : vector<16xf32> to vector<1x16xf32>
    %cst_6 = arith.constant 3.200000e+01 : f32
    %11 = vector.broadcast %cst_6 : f32 to vector<1x16xf32>
    %12 = arith.divf %10, %11 : vector<1x16xf32>
    %13 = vector.broadcast %12 : vector<1x16xf32> to vector<32x16xf32>
    %14 = arith.subf %8, %13 : vector<32x16xf32>
    %15 = arith.mulf %14, %14 : vector<32x16xf32>
    %cst_7 = arith.constant dense<0.000000e+00> : vector<16xf32>
    %16 = vector.multi_reduction <add>, %15, %cst_7 [0] : vector<32x16xf32> to vector<16xf32>
    %17 = vector.shape_cast %16 : vector<16xf32> to vector<1x16xf32>
    %cst_8 = arith.constant 3.200000e+01 : f32
    %18 = vector.broadcast %cst_8 : f32 to vector<1x16xf32>
    %19 = arith.divf %17, %18 : vector<1x16xf32>
    %20 = vector.broadcast %12 : vector<1x16xf32> to vector<32x16xf32>
    %21 = arith.subf %8, %20 : vector<32x16xf32>
    %cst_9 = arith.constant 9.99999974E-6 : f32
    %22 = vector.broadcast %cst_9 : f32 to vector<1x16xf32>
    %23 = arith.addf %19, %22 : vector<1x16xf32>
    %24 = math.rsqrt %23 : vector<1x16xf32>
    %25 = vector.broadcast %24 : vector<1x16xf32> to vector<32x16xf32>
    %26 = arith.mulf %21, %25 : vector<32x16xf32>
    %27 = vector.extract_strided_slice %0 {offsets = [0, 0], sizes = [32, 1], strides = [1, 1]} : vector<32x6xf32> to vector<32x1xf32>
    %28 = vector.broadcast %27 : vector<32x1xf32> to vector<32x16xf32>
    %29 = arith.mulf %26, %28 : vector<32x16xf32>
    %30 = vector.extract_strided_slice %0 {offsets = [0, 1], sizes = [32, 1], strides = [1, 1]} : vector<32x6xf32> to vector<32x1xf32>
    %31 = vector.broadcast %30 : vector<32x1xf32> to vector<32x16xf32>
    %32 = arith.addf %29, %31 : vector<32x16xf32>
    %c0_10 = arith.constant 0 : index
    %c0_11 = arith.constant 0 : index
    %33 = vector.load %arg4[%c0_10, %c0_11] : memref<96x32xbf16, #tpu.memory_space<vmem>>, vector<96x32xbf16>
    %34 = arith.truncf %32 : vector<32x16xf32> to vector<32x16xbf16>
    %cst_12 = arith.constant dense<0.000000e+00> : vector<96x16xf32>
    %35 = tpu.matmul %33, %34, %cst_12 {dimension_numbers = #tpu.dot_dimension_numbers<[1], [0], [0], [1], [0, 0, 1, 1], [], []>} : vector<96x32xbf16>, vector<32x16xbf16>, vector<96x16xf32> -> vector<96x16xf32>
    %36 = vector.broadcast %2 : vector<96x1xf32> to vector<96x16xf32>
    %37 = arith.addf %35, %36 : vector<96x16xf32>
    %cst_13 = arith.constant 0.000000e+00 : f32
    %38 = vector.broadcast %cst_13 : f32 to vector<96x16xf32>
    %39 = arith.maximumf %37, %38 : vector<96x16xf32>
    %40 = vector.extract_strided_slice %39 {offsets = [32, 0], sizes = [64, 16], strides = [1, 1]} : vector<96x16xf32> to vector<64x16xf32>
    %41 = arith.truncf %40 : vector<64x16xf32> to vector<64x16xbf16>
    %c0_14 = arith.constant 0 : index
    %c0_15 = arith.constant 0 : index
    %42 = vector.load %arg2[%c0_14, %c0_15] : memref<16x16xf32, #tpu.memory_space<vmem>>, vector<16x16xf32>
    %cst_16 = arith.constant 0.000000e+00 : f32
    %43 = vector.broadcast %cst_16 : f32 to vector<32x16xf32>
    %44 = vector.extract_strided_slice %39 {offsets = [0, 0], sizes = [16, 16], strides = [1, 1]} : vector<96x16xf32> to vector<16x16xf32>
    %45 = vector.extract_strided_slice %41 {offsets = [0, 0], sizes = [16, 16], strides = [1, 1]} : vector<64x16xbf16> to vector<16x16xbf16>
    %46 = vector.extract_strided_slice %41 {offsets = [32, 0], sizes = [16, 16], strides = [1, 1]} : vector<64x16xbf16> to vector<16x16xbf16>
    %47 = tpu.transpose %44, [1, 0] : vector<16x16xf32> -> vector<16x16xf32>
    %48 = arith.truncf %47 : vector<16x16xf32> to vector<16x16xbf16>
    %cst_17 = arith.constant dense<0.000000e+00> : vector<16x16xf32>
    %49 = tpu.matmul %48, %45, %cst_17 {dimension_numbers = #tpu.dot_dimension_numbers<[1], [0], [0], [1], [0, 0, 1, 1], [], []>} : vector<16x16xbf16>, vector<16x16xbf16>, vector<16x16xf32> -> vector<16x16xf32>
    %cst_18 = arith.constant 2.500000e-01 : f32
    %50 = vector.broadcast %cst_18 : f32 to vector<16x16xf32>
    %51 = arith.mulf %49, %50 : vector<16x16xf32>
    %cst_19 = arith.constant 0.000000e+00 : f32
    %52 = vector.broadcast %cst_19 : f32 to vector<16x16xf32>
    %53 = arith.maximumf %51, %52 : vector<16x16xf32>
    %54 = arith.mulf %53, %42 : vector<16x16xf32>
    %55 = arith.truncf %54 : vector<16x16xf32> to vector<16x16xbf16>
    %cst_20 = arith.constant dense<0.000000e+00> : vector<16x16xf32>
    %56 = tpu.matmul %46, %55, %cst_20 {dimension_numbers = #tpu.dot_dimension_numbers<[1], [1], [0], [0], [0, 0, 1, 0], [], []>} : vector<16x16xbf16>, vector<16x16xbf16>, vector<16x16xf32> -> vector<16x16xf32>
    %c0_21 = arith.constant 0 : index
    %c0_22 = arith.constant 0 : index
    %c0_23 = arith.constant 0 : index
    %57 = vector.load %arg5[%c0_21, %c0_22, %c0_23] : memref<2x32x16xbf16, #tpu.memory_space<vmem>>, vector<1x32x16xbf16>
    %58 = vector.shape_cast %57 : vector<1x32x16xbf16> to vector<32x16xbf16>
    %59 = arith.truncf %56 : vector<16x16xf32> to vector<16x16xbf16>
    %cst_24 = arith.constant dense<0.000000e+00> : vector<32x16xf32>
    %60 = tpu.matmul %58, %59, %cst_24 {dimension_numbers = #tpu.dot_dimension_numbers<[1], [0], [0], [1], [0, 0, 1, 1], [], []>} : vector<32x16xbf16>, vector<16x16xbf16>, vector<32x16xf32> -> vector<32x16xf32>
    %61 = arith.addf %43, %60 : vector<32x16xf32>
    %62 = vector.extract_strided_slice %39 {offsets = [16, 0], sizes = [16, 16], strides = [1, 1]} : vector<96x16xf32> to vector<16x16xf32>
    %63 = vector.extract_strided_slice %41 {offsets = [16, 0], sizes = [16, 16], strides = [1, 1]} : vector<64x16xbf16> to vector<16x16xbf16>
    %64 = vector.extract_strided_slice %41 {offsets = [48, 0], sizes = [16, 16], strides = [1, 1]} : vector<64x16xbf16> to vector<16x16xbf16>
    %65 = tpu.transpose %62, [1, 0] : vector<16x16xf32> -> vector<16x16xf32>
    %66 = arith.truncf %65 : vector<16x16xf32> to vector<16x16xbf16>
    %cst_25 = arith.constant dense<0.000000e+00> : vector<16x16xf32>
    %67 = tpu.matmul %66, %63, %cst_25 {dimension_numbers = #tpu.dot_dimension_numbers<[1], [0], [0], [1], [0, 0, 1, 1], [], []>} : vector<16x16xbf16>, vector<16x16xbf16>, vector<16x16xf32> -> vector<16x16xf32>
    %cst_26 = arith.constant 2.500000e-01 : f32
    %68 = vector.broadcast %cst_26 : f32 to vector<16x16xf32>
    %69 = arith.mulf %67, %68 : vector<16x16xf32>
    %cst_27 = arith.constant 0.000000e+00 : f32
    %70 = vector.broadcast %cst_27 : f32 to vector<16x16xf32>
    %71 = arith.maximumf %69, %70 : vector<16x16xf32>
    %72 = arith.mulf %71, %42 : vector<16x16xf32>
    %73 = arith.truncf %72 : vector<16x16xf32> to vector<16x16xbf16>
    %cst_28 = arith.constant dense<0.000000e+00> : vector<16x16xf32>
    %74 = tpu.matmul %64, %73, %cst_28 {dimension_numbers = #tpu.dot_dimension_numbers<[1], [1], [0], [0], [0, 0, 1, 0], [], []>} : vector<16x16xbf16>, vector<16x16xbf16>, vector<16x16xf32> -> vector<16x16xf32>
    %c1 = arith.constant 1 : index
    %c0_29 = arith.constant 0 : index
    %c0_30 = arith.constant 0 : index
    %75 = vector.load %arg5[%c1, %c0_29, %c0_30] : memref<2x32x16xbf16, #tpu.memory_space<vmem>>, vector<1x32x16xbf16>
    %76 = vector.shape_cast %75 : vector<1x32x16xbf16> to vector<32x16xbf16>
    %77 = arith.truncf %74 : vector<16x16xf32> to vector<16x16xbf16>
    %cst_31 = arith.constant dense<0.000000e+00> : vector<32x16xf32>
    %78 = tpu.matmul %76, %77, %cst_31 {dimension_numbers = #tpu.dot_dimension_numbers<[1], [0], [0], [1], [0, 0, 1, 1], [], []>} : vector<32x16xbf16>, vector<16x16xbf16>, vector<32x16xf32> -> vector<32x16xf32>
    %79 = arith.addf %61, %78 : vector<32x16xf32>
    %80 = arith.addf %8, %79 : vector<32x16xf32>
    %81 = vector.broadcast %3 : vector<32x1xf32> to vector<32x16xf32>
    %82 = arith.addf %80, %81 : vector<32x16xf32>
    %cst_32 = arith.constant dense<0.000000e+00> : vector<16xf32>
    %83 = vector.multi_reduction <add>, %82, %cst_32 [0] : vector<32x16xf32> to vector<16xf32>
    %84 = vector.shape_cast %83 : vector<16xf32> to vector<1x16xf32>
    %cst_33 = arith.constant 3.200000e+01 : f32
    %85 = vector.broadcast %cst_33 : f32 to vector<1x16xf32>
    %86 = arith.divf %84, %85 : vector<1x16xf32>
    %87 = vector.broadcast %86 : vector<1x16xf32> to vector<32x16xf32>
    %88 = arith.subf %82, %87 : vector<32x16xf32>
    %89 = arith.mulf %88, %88 : vector<32x16xf32>
    %cst_34 = arith.constant dense<0.000000e+00> : vector<16xf32>
    %90 = vector.multi_reduction <add>, %89, %cst_34 [0] : vector<32x16xf32> to vector<16xf32>
    %91 = vector.shape_cast %90 : vector<16xf32> to vector<1x16xf32>
    %cst_35 = arith.constant 3.200000e+01 : f32
    %92 = vector.broadcast %cst_35 : f32 to vector<1x16xf32>
    %93 = arith.divf %91, %92 : vector<1x16xf32>
    %94 = vector.broadcast %86 : vector<1x16xf32> to vector<32x16xf32>
    %95 = arith.subf %82, %94 : vector<32x16xf32>
    %cst_36 = arith.constant 9.99999974E-6 : f32
    %96 = vector.broadcast %cst_36 : f32 to vector<1x16xf32>
    %97 = arith.addf %93, %96 : vector<1x16xf32>
    %98 = math.rsqrt %97 : vector<1x16xf32>
    %99 = vector.broadcast %98 : vector<1x16xf32> to vector<32x16xf32>
    %100 = arith.mulf %95, %99 : vector<32x16xf32>
    %101 = vector.extract_strided_slice %0 {offsets = [0, 2], sizes = [32, 1], strides = [1, 1]} : vector<32x6xf32> to vector<32x1xf32>
    %102 = vector.broadcast %101 : vector<32x1xf32> to vector<32x16xf32>
    %103 = arith.mulf %100, %102 : vector<32x16xf32>
    %104 = vector.extract_strided_slice %0 {offsets = [0, 3], sizes = [32, 1], strides = [1, 1]} : vector<32x6xf32> to vector<32x1xf32>
    %105 = vector.broadcast %104 : vector<32x1xf32> to vector<32x16xf32>
    %106 = arith.addf %103, %105 : vector<32x16xf32>
    %c0_37 = arith.constant 0 : index
    %c0_38 = arith.constant 0 : index
    %107 = vector.load %arg6[%c0_37, %c0_38] : memref<64x32xbf16, #tpu.memory_space<vmem>>, vector<64x32xbf16>
    %108 = arith.truncf %106 : vector<32x16xf32> to vector<32x16xbf16>
    %cst_39 = arith.constant dense<0.000000e+00> : vector<64x16xf32>
    %109 = tpu.matmul %107, %108, %cst_39 {dimension_numbers = #tpu.dot_dimension_numbers<[1], [0], [0], [1], [0, 0, 1, 1], [], []>} : vector<64x32xbf16>, vector<32x16xbf16>, vector<64x16xf32> -> vector<64x16xf32>
    %110 = vector.broadcast %5 : vector<64x1xf32> to vector<64x16xf32>
    %111 = arith.addf %109, %110 : vector<64x16xf32>
    %cst_40 = arith.constant 0.000000e+00 : f32
    %112 = vector.broadcast %cst_40 : f32 to vector<64x16xf32>
    %113 = arith.maximumf %111, %112 : vector<64x16xf32>
    %c0_41 = arith.constant 0 : index
    %c0_42 = arith.constant 0 : index
    %114 = vector.load %arg7[%c0_41, %c0_42] : memref<32x64xbf16, #tpu.memory_space<vmem>>, vector<32x64xbf16>
    %115 = arith.truncf %113 : vector<64x16xf32> to vector<64x16xbf16>
    %cst_43 = arith.constant dense<0.000000e+00> : vector<32x16xf32>
    %116 = tpu.matmul %114, %115, %cst_43 {dimension_numbers = #tpu.dot_dimension_numbers<[1], [0], [0], [1], [0, 0, 1, 1], [], []>} : vector<32x64xbf16>, vector<64x16xbf16>, vector<32x16xf32> -> vector<32x16xf32>
    %117 = arith.addf %82, %116 : vector<32x16xf32>
    %118 = vector.broadcast %4 : vector<32x1xf32> to vector<32x16xf32>
    %119 = arith.addf %117, %118 : vector<32x16xf32>
    %cst_44 = arith.constant 0.000000e+00 : f32
    %120 = vector.broadcast %cst_44 : f32 to vector<32x16xf32>
    %121 = arith.maximumf %119, %120 : vector<32x16xf32>
    %cst_45 = arith.constant dense<0.000000e+00> : vector<16xf32>
    %122 = vector.multi_reduction <add>, %121, %cst_45 [0] : vector<32x16xf32> to vector<16xf32>
    %123 = vector.shape_cast %122 : vector<16xf32> to vector<1x16xf32>
    %cst_46 = arith.constant 3.200000e+01 : f32
    %124 = vector.broadcast %cst_46 : f32 to vector<1x16xf32>
    %125 = arith.divf %123, %124 : vector<1x16xf32>
    %126 = vector.broadcast %125 : vector<1x16xf32> to vector<32x16xf32>
    %127 = arith.subf %121, %126 : vector<32x16xf32>
    %128 = arith.mulf %127, %127 : vector<32x16xf32>
    %cst_47 = arith.constant dense<0.000000e+00> : vector<16xf32>
    %129 = vector.multi_reduction <add>, %128, %cst_47 [0] : vector<32x16xf32> to vector<16xf32>
    %130 = vector.shape_cast %129 : vector<16xf32> to vector<1x16xf32>
    %cst_48 = arith.constant 3.200000e+01 : f32
    %131 = vector.broadcast %cst_48 : f32 to vector<1x16xf32>
    %132 = arith.divf %130, %131 : vector<1x16xf32>
    %133 = vector.broadcast %125 : vector<1x16xf32> to vector<32x16xf32>
    %134 = arith.subf %121, %133 : vector<32x16xf32>
    %cst_49 = arith.constant 9.99999974E-6 : f32
    %135 = vector.broadcast %cst_49 : f32 to vector<1x16xf32>
    %136 = arith.addf %132, %135 : vector<1x16xf32>
    %137 = math.rsqrt %136 : vector<1x16xf32>
    %138 = vector.broadcast %137 : vector<1x16xf32> to vector<32x16xf32>
    %139 = arith.mulf %134, %138 : vector<32x16xf32>
    %140 = vector.extract_strided_slice %0 {offsets = [0, 4], sizes = [32, 1], strides = [1, 1]} : vector<32x6xf32> to vector<32x1xf32>
    %141 = vector.broadcast %140 : vector<32x1xf32> to vector<32x16xf32>
    %142 = arith.mulf %139, %141 : vector<32x16xf32>
    %143 = vector.extract_strided_slice %0 {offsets = [0, 5], sizes = [32, 1], strides = [1, 1]} : vector<32x6xf32> to vector<32x1xf32>
    %144 = vector.broadcast %143 : vector<32x1xf32> to vector<32x16xf32>
    %145 = arith.addf %142, %144 : vector<32x16xf32>
    %cst_50 = arith.constant 0.000000e+00 : f32
    %146 = vector.broadcast %cst_50 : f32 to vector<32x16xf32>
    %147 = arith.maximumf %145, %146 : vector<32x16xf32>
    %c0_51 = arith.constant 0 : index
    %c0_52 = arith.constant 0 : index
    %148 = vector.load %arg3[%c0_51, %c0_52] : memref<2x16xf32, #tpu.memory_space<vmem>>, vector<2x16xf32>
    %cst_53 = arith.constant dense<0.000000e+00> : vector<2x32xf32>
    %149 = tpu.matmul %148, %147, %cst_53 {dimension_numbers = #tpu.dot_dimension_numbers<[1], [1], [0], [0], [0, 0, 1, 0], [], []>} : vector<2x16xf32>, vector<32x16xf32>, vector<2x32xf32> -> vector<2x32xf32>
    %c0_54 = arith.constant 0 : index
    %c0_55 = arith.constant 0 : index
    %150 = vector.load %arg10[%c0_54, %c0_55] : memref<32x256xf32, #tpu.memory_space<vmem>>, vector<32x256xf32>
    %cst_56 = arith.constant dense<0.000000e+00> : vector<2x256xf32>
    %151 = tpu.matmul %149, %150, %cst_56 {dimension_numbers = #tpu.dot_dimension_numbers<[1], [0], [0], [1], [0, 0, 1, 1], [], []>} : vector<2x32xf32>, vector<32x256xf32>, vector<2x256xf32> -> vector<2x256xf32>
    %c0_57 = arith.constant 0 : index
    %c0_58 = arith.constant 0 : index
    %152 = vector.load %arg11[%c0_57, %c0_58] : memref<1x256xf32, #tpu.memory_space<vmem>>, vector<1x256xf32>
    %153 = vector.broadcast %152 : vector<1x256xf32> to vector<2x256xf32>
    %154 = arith.addf %151, %153 : vector<2x256xf32>
    %cst_59 = arith.constant 0.000000e+00 : f32
    %155 = vector.broadcast %cst_59 : f32 to vector<2x256xf32>
    %156 = arith.maximumf %154, %155 : vector<2x256xf32>
    %c0_60 = arith.constant 0 : index
    %c0_61 = arith.constant 0 : index
    %157 = vector.load %arg12[%c0_60, %c0_61] : memref<2x256xf32, #tpu.memory_space<vmem>>, vector<2x256xf32>
    tpu.vector_store %arg12[%c0_60, %c0_61], %156 {strides = array<i32>} : memref<2x256xf32, #tpu.memory_space<vmem>>, vector<2x256xf32>,
    return
  }
  func.func @transform_0(%arg0: i32) -> (i32, i32) {
    %c0_i32 = arith.constant 0 : i32
    %c0_i32_0 = arith.constant 0 : i32
    return %c0_i32, %arg0 : i32, i32
  }
  func.func @transform_1(%arg0: i32) -> (i32, i32) {
    %c0_i32 = arith.constant 0 : i32
    %c0_i32_0 = arith.constant 0 : i32
    %c0_i32_1 = arith.constant 0 : i32
    return %c0_i32, %c0_i32_0 : i32, i32
  }
  func.func @transform_2(%arg0: i32) -> (i32, i32) {
    %c0_i32 = arith.constant 0 : i32
    %c0_i32_0 = arith.constant 0 : i32
    %c0_i32_1 = arith.constant 0 : i32
    return %c0_i32, %c0_i32_0 : i32, i32
  }
  func.func @transform_3(%arg0: i32) -> (i32, i32) {
    %c0_i32 = arith.constant 0 : i32
    %c0_i32_0 = arith.constant 0 : i32
    %c0_i32_1 = arith.constant 0 : i32
    return %c0_i32, %c0_i32_0 : i32, i32
  }
  func.func @transform_4(%arg0: i32) -> (i32, i32, i32) {
    %c0_i32 = arith.constant 0 : i32
    %c0_i32_0 = arith.constant 0 : i32
    %c0_i32_1 = arith.constant 0 : i32
    %c0_i32_2 = arith.constant 0 : i32
    return %c0_i32, %c0_i32_0, %c0_i32_1 : i32, i32, i32
  }
  func.func @transform_5(%arg0: i32) -> (i32, i32) {
    %c0_i32 = arith.constant 0 : i32
    %c0_i32_0 = arith.constant 0 : i32
    %c0_i32_1 = arith.constant 0 : i32
    return %c0_i32, %c0_i32_0 : i32, i32
  }
  func.func @transform_6(%arg0: i32) -> (i32, i32) {
    %c0_i32 = arith.constant 0 : i32
    %c0_i32_0 = arith.constant 0 : i32
    %c0_i32_1 = arith.constant 0 : i32
    return %c0_i32, %c0_i32_0 : i32, i32
  }
  func.func @transform_7(%arg0: i32) -> (i32, i32) {
    %c0_i32 = arith.constant 0 : i32
    %c0_i32_0 = arith.constant 0 : i32
    %c0_i32_1 = arith.constant 0 : i32
    return %c0_i32, %c0_i32_0 : i32, i32
  }
  func.func @transform_8(%arg0: i32) -> (i32, i32) {
    %c0_i32 = arith.constant 0 : i32
    %c0_i32_0 = arith.constant 0 : i32
    %c0_i32_1 = arith.constant 0 : i32
    return %c0_i32, %c0_i32_0 : i32, i32
  }
  func.func @transform_9(%arg0: i32) -> (i32, i32) {
    %c0_i32 = arith.constant 0 : i32
    %c0_i32_0 = arith.constant 0 : i32
    %c0_i32_1 = arith.constant 0 : i32
    return %c0_i32, %c0_i32_0 : i32, i32
  }
  func.func @transform_10(%arg0: i32) -> (i32, i32) {
    %c0_i32 = arith.constant 0 : i32
    %c0_i32_0 = arith.constant 0 : i32
    %c0_i32_1 = arith.constant 0 : i32
    return %c0_i32, %c0_i32_0 : i32, i32
  }
  func.func @transform_11(%arg0: i32) -> (i32, i32) {
    %c0_i32 = arith.constant 0 : i32
    %c0_i32_0 = arith.constant 0 : i32
    return %arg0, %c0_i32 : i32, i32
  }
}

</mosaic_0001>

<bundles_post_ra>
// kernel: tpu_custom_call.1
= control target key start
LH: loop header
LB: loop body
LE: loop exit
PB: predicated region body
PF: predicated region fallthrough
CT: control target
= control target key end

     0   :  { %v1704_v1 = vmov 1   ;;  %v1705_v2 = vmov 0   ;;  %vm80_vm0 = vcmask 130048   ;;  %s2123_s0 = inlined_call_operand.vmem [shape: f32[32,16], index: 0, kind: input, shape index: {}]   ;;  %s2124_s1 = inlined_call_operand.vmem [shape: f32[16,16], index: 1, kind: input, shape index: {}]   ;;  %s2125_s2 = inlined_call_operand.vmem [shape: f32[2,16], index: 2, kind: input, shape index: {}]   ;;  %s2126_s3 = inlined_call_operand.vmem [shape: bf16[96,32], index: 3, kind: input, shape index: {}]   ;;  %s2127_s4 = inlined_call_operand.vmem [shape: bf16[2,32,16], index: 4, kind: input, shape index: {}]   ;;  %s2128_s5 = inlined_call_operand.vmem [shape: bf16[64,32], index: 5, kind: input, shape index: {}]   ;;  %s2129_s6 = inlined_call_operand.vmem [shape: bf16[32,64], index: 6, kind: input, shape index: {}]   ;;  %s2130_s7 = inlined_call_operand.vmem [shape: f32[224,1], index: 7, kind: input, shape index: {}]   ;;  %s2131_s8 = inlined_call_operand.vmem [shape: f32[32,6], index: 8, kind: input, shape index: {}]   ;;  %s2132_s9 = inlined_call_operand.vmem [shape: f32[32,256], index: 9, kind: input, shape index: {}]   ;;  %s2133_s10 = inlined_call_operand.vmem [shape: f32[1,256], index: 10, kind: input, shape index: {}]   ;;  %s2134_s11 = inlined_call_operand.hbm [shape: f32[2,256], index: 11, kind: output, shape index: {}]  }
   0x1   :  { %v1776_v0 = vld [vmem:[%s2131_s8 + $0x10] sm:$0xff]  ;;  %1641 = vset.pattern.permute.xlu1 %v1704_v1  ;;  %1640 = vset.pattern.permute.xlu0 %v1705_v2  ;;  %v72_v3 = vld [vmem:[%s2123_s0] sm:$0xff]  ;;  %v73_v4 = vld [vmem:[%s2123_s0 + $0x8] sm:$0xff] }
   0x2   :  { %157 = vperm.xlu1 %1641, %v1776_v0   ;;  %136 = vperm.xlu0 %1640, %v1776_v0   ;;  %v74_v5 = vld [vmem:[%s2123_s0 + $0x10] sm:$0xff]  ;;  %v1790_v6 = vmax.f32 %v72_v3, 0.0  ;;  %v1792_v7 = vmax.f32 %v73_v4, 0.0  ;;  %v1797_v8 = vld [vmem:[%s2131_s8 + $0x18] sm:$0xff]  ;;  %v1804_v10 = vld [vmem:[%s2131_s8] sm:$0xff] }
   0x3   :  { %v1799_v9 = vmax.f32 %v74_v5, 0.0  ;;  %v1815_v13 = vld [vmem:[%s2131_s8 + $0x8] sm:$0xff]  ;;  %v75_v14 = vld [vmem:[%s2123_s0 + $0x18] sm:$0xff] }
   0x4   :  { %v81_v11 = vsel %vm80_vm0, %v1790_v6, 0.0  ;;  %v82_v12 = vsel %vm80_vm0, %v1792_v7, 0.0  ;;  %v1823_v15 = vmax.f32 %v75_v14, 0.0 }
   0x5   :  { %v84_v16 = vsel %vm80_vm0, %v1799_v9, 0.0  ;;  %v83_v17 = vadd.f32 %v82_v12, %v81_v11 }
   0x6   :  { %161 = vperm.xlu1 %1641, %v1797_v8   ;;  %141 = vperm.xlu0 %1640, %v1797_v8  }
   0xa   :  { %1642 = vset.pattern.permute.xlu1 %v1705_v2  ;;  %126 = vperm.xlu0 %1640, %v1804_v10  }
   0xb   :  { %131 = vperm.xlu1 %1642, %v1815_v13  }
   0xe   :  { %1643 = vset.pattern.permute.xlu0 %v1704_v1 }
   0xf   :  { %16 = vsyncpa [#allocation3], 0  ;;  %1644 = vset.pattern.permute.xlu1 %v1704_v1  ;;  %149 = vperm.xlu0 %1643, %v1804_v10   ;;  %v85_v18 = vadd.f32 %v84_v16, %v83_v17  ;;  %v1660_v19 = vld [vmem:[%s2126_s3] sm:$0xff]   ;;  %vm272_vm1 = vcmask 261120   ;;  %v86_v20 = vsel %vm80_vm0, %v1823_v15, 0.0  ;;  %v45_v28 = vld [vmem:[%s2130_s7 + $0x8] sm:$0xff] }
  0x10   :  { %153 = vperm.xlu1 %1644, %v1815_v13   ;;  %1548 = vmatprep.mubr.msk.bf16.mxu0 %vm272_vm1, %v1660_v19  ;;  %v44_v25 = vld [vmem:[%s2130_s7] sm:$0xff]  ;;  %v49_v30 = vld [vmem:[%s2130_s7 + $0x28] sm:$0xff]  ;;  %v46_v32 = vld [vmem:[%s2130_s7 + $0x10] sm:$0xff]  ;;  %vm1707_vm2 = vmmov 0   ;;  %vm1076_vm3 = vcmask 523264  }
  0x11   :  { %v87_v21 = vadd.f32 %v86_v20, %v85_v18  ;;  %v48_v27 = vld [vmem:[%s2130_s7 + $0x20] sm:$0xff]  ;;  %v47_v34 = vld [vmem:[%s2130_s7 + $0x18] sm:$0xff]  ;;  %v53_v41 = vld [vmem:[%s2130_s7 + $0x48] sm:$0xff] }
  0x12   :  { %v52_v37 = vld [vmem:[%s2130_s7 + $0x40] sm:$0xff]  ;;  %v50_v46 = vld [vmem:[%s2130_s7 + $0x30] sm:$0xff]  ;;  %v51_v50 = vld [vmem:[%s2130_s7 + $0x38] sm:$0xff] }
  0x13   :  { %1646 = vset.pattern.permute.xlu0 %v1705_v2  ;;  %v88_v22 = vrot.slane %v87_v21, 4 }
  0x14   :  { %1645 = vset.pattern.permute.xlu1 %v1705_v2  ;;  %189 = vperm.xlu0 %1646, %v45_v28  }
  0x15   :  { %v89_v23 = vadd.f32 %v88_v22, %v87_v21  ;;  %184 = vperm.xlu1 %1645, %v44_v25  }
  0x17   :  { %v90_v24 = vrot.slane %v89_v23, 2 }
  0x19   :  { %v91_v26 = vadd.f32 %v90_v24, %v89_v23  ;;  %204 = vperm.xlu1 %1645, %v48_v27  }
  0x1b   :  { %v92_v29 = vrot.slane %v91_v26, 1 }
  0x1d   :  { %v93_v31 = vadd.f32 %v92_v29, %v91_v26  ;;  %209 = vperm.xlu1 %1645, %v49_v30   ;;  %v1661_v30 = vld [vmem:[%s2126_s3 + $0x8] sm:$0xff]  }
  0x1f   :  { %v95_v33 = vmul.f32 0.03125, %v93_v31  ;;  %v1662_v31 = vld [vmem:[%s2126_s3 + $0x10] sm:$0xff]  }
  0x21   :  { %194 = vperm.xlu1 %1645, %v46_v32   ;;  %v96_v35 = vsub.f32 %v1790_v6, %v95_v33  ;;  %v97_v36 = vsub.f32 %v1792_v7, %v95_v33  ;;  %v98_v38 = vsub.f32 %v1799_v9, %v95_v33  ;;  %v99_v42 = vsub.f32 %v1823_v15, %v95_v33  ;;  %v1663_v32 = vld [vmem:[%s2126_s3 + $0x18] sm:$0xff]   ;;  %v1664_v33 = vld [vmem:[%s2126_s3 + $0x20] sm:$0xff]  }
  0x23   :  { %v100_v39 = vmul.f32 %v96_v35, %v96_v35  ;;  %v101_v40 = vmul.f32 %v97_v36, %v97_v36  ;;  %v102_v43 = vmul.f32 %v98_v38, %v98_v38  ;;  %v103_v48 = vmul.f32 %v99_v42, %v99_v42 }
  0x25   :  { %199 = vperm.xlu1 %1645, %v47_v34   ;;  %v104_v44 = vsel %vm80_vm0, %v100_v39, 0.0  ;;  %v105_v45 = vsel %vm80_vm0, %v101_v40, 0.0  ;;  %v107_v49 = vsel %vm80_vm0, %v102_v43, 0.0  ;;  %v109_v52 = vsel %vm80_vm0, %v103_v48, 0.0  ;;  %v1665_v34 = vld [vmem:[%s2126_s3 + $0x28] sm:$0xff]  }
  0x26   :  { %v106_v47 = vadd.f32 %v105_v45, %v104_v44 }
  0x28   :  { %v108_v51 = vadd.f32 %v107_v49, %v106_v47 }
  0x29   :  { %224 = vperm.xlu1 %1645, %v52_v37  }
  0x2a   :  { %v110_v53 = vadd.f32 %v109_v52, %v108_v51 }
  0x2c   :  { %v111_v54 = vrot.slane %v110_v53, 4 }
  0x2d   :  { %229 = vperm.xlu1 %1645, %v53_v41  }
  0x2e   :  { %v112_v55 = vadd.f32 %v111_v54, %v110_v53 }
  0x30   :  { %v113_v56 = vrot.slane %v112_v55, 2 }
  0x31   :  { %214 = vperm.xlu1 %1645, %v50_v46  }
  0x32   :  { %v114_v57 = vadd.f32 %v113_v56, %v112_v55 }
  0x34   :  { %v115_v58 = vrot.slane %v114_v57, 1 }
  0x35   :  { %219 = vperm.xlu1 %1645, %v51_v50  }
  0x36   :  { %v116_v59 = vadd.f32 %v115_v58, %v114_v57 }
  0x38   :  { %v117_v60 = vmul.f32 0.03125, %v116_v59 }
  0x3a   :  { %v118_v61 = vadd.f32 1e-05, %v117_v60 }
  0x3c   :  { %1676 = vrsqrt.f32 %v118_v61 }
  0x49   :  { %v1677_v62 = vpop.eup %1676 }
  0x4a   :  { %v122_v63 = vmul.f32 %v1677_v62, %v98_v38  ;;  %v123_v4 = vmul.f32 %v1677_v62, %v99_v42  ;;  %v120_v18 = vmul.f32 %v1677_v62, %v96_v35  ;;  %v121_v20 = vmul.f32 %v1677_v62, %v97_v36 }
  0x4b   :  { %v1706_v35 = vmov 0.0  }
  0x4c   :  { %1560 = vmatprep.subr.bf16.mxu1 %v1706_v35  ;;  %1562 = vmatprep.mubr.msk.bf16.mxu1 %vm1707_vm2, %v1706_v35 }
  0x7d   :  { %v158_v1 = vpop.permute.xlu1 %157  ;;  %v137_v3 = vpop.permute.xlu0 %136 }
  0x7e   :  { %v146_v5 = vmul.f32 %v137_v3, %v122_v63 }
  0x80   :  { %v166_v16 = vadd.f32 %v158_v1, %v146_v5 }
  0x81   :  { %v162_v11 = vpop.permute.xlu1 %161  ;;  %v142_v12 = vpop.permute.xlu0 %141 }
  0x82   :  { %v147_v14 = vmul.f32 %v142_v12, %v123_v4 }
  0x84   :  { %v167_v17 = vadd.f32 %v162_v11, %v147_v14 }
  0x85   :  { %v127_v19 = vpop.permute.xlu0 %126 }
  0x86   :  { %v132_v21 = vpop.permute.xlu1 %131  ;;  %v181_v22 = vpack.c.bf16 %v167_v17, %v166_v16  ;;  %v144_v23 = vmul.f32 %v127_v19, %v120_v18  ;;  %v55_v17 = vld [vmem:[%s2130_s7 + $0x58] sm:$0xff]  ;;  %v54_v18 = vld [vmem:[%s2130_s7 + $0x50] sm:$0xff]  ;;  %v56_v19 = vld [vmem:[%s2130_s7 + $0x60] sm:$0xff] }
  0x87   :  { %v145_v24 = vmul.f32 %v132_v21, %v121_v20  ;;  %v57_v20 = vld [vmem:[%s2130_s7 + $0x68] sm:$0xff]  ;;  %v58_v21 = vld [vmem:[%s2130_s7 + $0x70] sm:$0xff] }
  0x88   :  { %1544 = vmatprep.subr.bf16.mxu0 %v181_v22 }
  0x89   :  { %1545 = vmatpush3.bf16.msra.mxu0 %v181_v22  ;;  %v59_v22 = vld [vmem:[%s2130_s7 + $0x78] sm:$0xff] }
  0x8a   :  { %v150_v25 = vpop.permute.xlu0 %149 }
  0x8b   :  { %v164_v26 = vadd.f32 %v150_v25, %v144_v23  ;;  %v154_v27 = vpop.permute.xlu1 %153 }
  0x8c   :  { %v165_v28 = vadd.f32 %v154_v27, %v145_v24 }
  0x8e   :  { %v180_v29 = vpack.c.bf16 %v165_v28, %v164_v26 }
  0x8f   :  { %v190_v49 = vpop.permute.xlu0 %189 }
  0x90   :  { %1546 = vmatprep.subr.bf16.mxu0 %v180_v29  ;;  %v185_v36 = vpop.permute.xlu1 %184 }
  0x91   :  { %1547 = vmatpush3.bf16.msra.mxu0 %v180_v29 }
  0x94   :  { %1549 = vmatmul.mubr.msk.bf16.vlgmr.msra.gmra.mxu0 %vm272_vm1, %v1661_v30  ;;  %v205_v37 = vpop.permute.xlu1 %204 }
  0x95   :  { %1552 = vmatprep.mubr.msk.bf16.mxu0 %vm272_vm1, %v1662_v31 }
  0x98   :  { %v210_v38 = vpop.permute.xlu1 %209 }
  0x9c   :  { %1553 = vmatmul.mubr.msk.bf16.gmra.mxu0 %vm272_vm1, %v1663_v32  ;;  %v195_v39 = vpop.permute.xlu1 %194 }
  0x9d   :  { %1556 = vmatprep.mubr.msk.bf16.mxu0 %vm272_vm1, %v1664_v33 }
  0xa0   :  { %v200_v40 = vpop.permute.xlu1 %199 }
  0xa4   :  { %1557 = vmatmul.mubr.msk.bf16.gmra.mxu0 %vm272_vm1, %v1665_v34  ;;  %v1896_v41 = vpop.permute.xlu1 %224 }
  0xa8   :  { %v1898_v42 = vpop.permute.xlu1 %229 }
  0xac   :  { %v215_v52 = vpop.permute.xlu1 %214 }
  0xb0   :  { %v220_v60 = vpop.permute.xlu1 %219 }
 0x154   :  { %v1550_v43 = vpop.f32.mrf.mxu0 }
 0x155   :  { %v334_v44 = vadd.f32 %v1550_v43, %v195_v39 }
 0x156   :  { %v325_v45 = vpop.f32.mrf.mxu0 }
 0x157   :  { %v374_v46 = vmax.f32 %v334_v44, 0.0  ;;  %v326_v47 = vadd.f32 %v325_v45, %v185_v36  ;;  %v388_v36 = vld [vmem:[%s2124_s1] sm:$0xff] }
 0x158   :  { %v1551_v48 = vpop.f32.mrf.mxu0 }
 0x159   :  { %v372_v50 = vmax.f32 %v326_v47, 0.0  ;;  %v337_v51 = vadd.f32 %v1551_v48, %v200_v40  ;;  %526 = vxpose.xlu1.b32.start [1/2] (short) (narrow) %v374_v46, 16 }
 0x15a   :  { %v328_v53 = vpop.f32.mrf.mxu0 }
 0x15b   :  { %v375_v54 = vmax.f32 %v337_v51, 0.0  ;;  %v329_v55 = vadd.f32 %v328_v53, %v190_v49  ;;  %390 = vxpose.xlu0.b32.start [1/2] (short) (narrow) %v372_v50, 16 }
 0x15c   :  { %v1554_v56 = vpop.f32.mrf.mxu0 }
 0x15d   :  { %v373_v57 = vmax.f32 %v329_v55, 0.0  ;;  %527 = vxpose.xlu1.b32.end [2/2] (short) (narrow) %v375_v54, 16  ;;  %v350_v59 = vadd.f32 %v1554_v56, %v215_v52 }
 0x15e   :  { %v341_v58 = vpop.f32.mrf.mxu0 }
 0x15f   :  { %391 = vxpose.xlu0.b32.end [2/2] (short) (narrow) %v373_v57, 16  ;;  %v342_v62 = vadd.f32 %v341_v58, %v205_v37  ;;  %v378_v3 = vmax.f32 %v350_v59, 0.0  ;;  %v389_v37 = vld [vmem:[%s2124_s1 + $0x8] sm:$0xff] }
 0x160   :  { %v1555_v61 = vpop.f32.mrf.mxu0 }
 0x161   :  { %v353_v63 = vadd.f32 %v1555_v61, %v220_v60  ;;  %v376_v11 = vmax.f32 %v342_v62, 0.0 }
 0x162   :  { %v344_v1 = vpop.f32.mrf.mxu0 }
 0x163   :  { %v379_v4 = vmax.f32 %v353_v63, 0.0  ;;  %v345_v5 = vadd.f32 %v344_v1, %v210_v38 }
 0x164   :  { %v1558_v26 = vpop.f32.mrf.mxu0 }
 0x165   :  { %v385_v12 = vpack.c.bf16 %v379_v4, %v378_v3  ;;  %v377_v14 = vmax.f32 %v345_v5, 0.0 }
 0x166   :  { %v357_v27 = vpop.f32.mrf.mxu0 }
 0x167   :  { %v384_v16 = vpack.c.bf16 %v377_v14, %v376_v11  ;;  %v358_v47 = vadd.f32 %v357_v27, %v1896_v41 }
 0x168   :  { %v1559_v31 = vpop.f32.mrf.mxu0 }
 0x169   :  { %1561 = vmatpush3.bf16.msra.mxu1 %v384_v16  ;;  %v380_v50 = vmax.f32 %v358_v47, 0.0  ;;  %v63_v47 = vld [vmem:[%s2130_s7 + $0x98] sm:$0xff] }
 0x16a   :  { %1566 = vmatprep.subr.bf16.mxu1 %v1706_v35  ;;  %v360_v40 = vpop.f32.mrf.mxu0 }
 0x16b   :  { %v361_v45 = vadd.f32 %v360_v40, %v1898_v42  ;;  %v64_v40 = vld [vmem:[%s2130_s7 + $0xa0] sm:$0xff] }
 0x16d   :  { %v381_v49 = vmax.f32 %v361_v45, 0.0  ;;  %v61_v45 = vld [vmem:[%s2130_s7 + $0x88] sm:$0xff] }
 0x16f   :  { %v386_v51 = vpack.c.bf16 %v381_v49, %v380_v50 }
 0x17b   :  { %239 = vperm.xlu1 %1645, %v55_v17  }
 0x188   :  { %234 = vperm.xlu0 %1646, %v54_v18  }
 0x18c   :  { %799 = vperm.xlu0 %1646, %v56_v19  }
 0x190   :  { %804 = vperm.xlu0 %1646, %v57_v20  }
 0x194   :  { %809 = vperm.xlu0 %1646, %v58_v21  }
 0x198   :  { %814 = vperm.xlu0 %1646, %v59_v22   ;;  %v1667_v22 = vld [vmem:[%s2127_s4] sm:$0xff]  }
 0x1d5   :  { %v542_v52 = vpop.trf.xlu1 }
 0x1d7   :  { %v406_v23 = vpop.trf.xlu0 }
 0x1d9   :  { %v543_v42 = vpop.trf.xlu1 }
 0x1da   :  { %v558_v53 = vpack.c.bf16 %v543_v42, %v542_v52 }
 0x1db   :  { %v407_v24 = vpop.trf.xlu0 }
 0x1dc   :  { %v422_v25 = vpack.c.bf16 %v407_v24, %v406_v23  ;;  %v1669_v23 = vld [vmem:[%s2127_s4 + $0x8] sm:$0xff]   ;;  %v1666_v24 = vld [vmem:[%s2127_s4 + $0x10] sm:$0xff]  }
 0x1dd   :  { %1586 = vmatprep.mubr.msk.bf16.mxu0 %vm80_vm0, %v1666_v24 }
 0x1de   :  { %1563 = vmatmul.mubr.msk.bf16.vlgmr.msra.gmra.mxu1 %vm80_vm0, %v422_v25  ;;  %v1708_v25 = vmov 3  }
 0x1df   :  { %1568 = vmatprep.mubr.msk.bf16.mxu1 %vm1707_vm2, %v1706_v35  ;;  %1648 = vset.pattern.permute.xlu1 %v1708_v25 }
 0x1e0   :  { %892 = vperm.xlu1 %1648, %v1776_v0  }
 0x1f6   :  { %v240_v11 = vpop.permute.xlu1 %239 }
 0x1f7   :  { %v369_v16 = vadd.f32 %v1559_v31, %v240_v11 }
 0x1f9   :  { %v383_v20 = vmax.f32 %v369_v16, 0.0 }
 0x203   :  { %v235_v3 = vpop.permute.xlu0 %234 }
 0x29e   :  { %v460_v28 = vpop.f32.mrf.mxu1 }
 0x29f   :  { %v467_v29 = vmul.f32 0.25, %v460_v28 }
 0x2a0   :  { %v1564_v30 = vpop.f32.mrf.mxu1 }
 0x2a1   :  { %v469_v33 = vmax.f32 %v467_v29, 0.0 }
 0x2a2   :  { %v463_v32 = vpop.f32.mrf.mxu1 }
 0x2a3   :  { %v468_v34 = vmul.f32 0.25, %v463_v32  ;;  %v471_v43 = vmul.f32 %v469_v33, %v388_v36  ;;  %v1668_v32 = vld [vmem:[%s2127_s4 + $0x18] sm:$0xff]   ;;  %v1670_v33 = vld [vmem:[%s2128_s5] sm:$0xff]  }
 0x2a4   :  { %v1565_v38 = vpop.f32.mrf.mxu1 }
 0x2a5   :  { %v470_v39 = vmax.f32 %v468_v34, 0.0  ;;  %v70_v34 = vld [vmem:[%s2130_s7 + $0xd0] sm:$0xff] }
 0x2a6   :  { %v66_v38 = vld [vmem:[%s2130_s7 + $0xb0] sm:$0xff] }
 0x2a7   :  { %v472_v44 = vmul.f32 %v470_v39, %v389_v37  ;;  %v67_v39 = vld [vmem:[%s2130_s7 + $0xb8] sm:$0xff] }
 0x2a9   :  { %v473_v46 = vpack.c.bf16 %v472_v44, %v471_v43  ;;  %v65_v43 = vld [vmem:[%s2130_s7 + $0xa8] sm:$0xff]  ;;  %v60_v44 = vld [vmem:[%s2130_s7 + $0x80] sm:$0xff] }
 0x2ab   :  { %v478_v48 = vsel %vm80_vm0, %v473_v46, 0  ;;  %v62_v46 = vld [vmem:[%s2130_s7 + $0x90] sm:$0xff] }
 0x2ac   :  { %1567 = vmatpush3.bf16.xpose.msra.mxu1 %v478_v48  ;;  %v800_v48 = vpop.permute.xlu0 %799 }
 0x2ad   :  { %1572 = vmatprep.subr.bf16.mxu1 %v1706_v35 }
 0x2b3   :  { %1569 = vmatmul.mubr.msk.bf16.vlgmr.msra.gmra.mxu1 %vm80_vm0, %v386_v51  ;;  %v805_v51 = vpop.permute.xlu0 %804 }
 0x2b4   :  { %1573 = vmatpush3.bf16.msra.mxu1 %v385_v12  ;;  %1574 = vmatprep.mubr.msk.bf16.mxu1 %vm1707_vm2, %v1706_v35  ;;  %v366_v12 = vadd.f32 %v1558_v26, %v235_v3  ;;  %v1709_v26 = vmov 2  }
 0x2b5   :  { %1578 = vmatprep.subr.bf16.mxu1 %v1706_v35  ;;  %1647 = vset.pattern.permute.xlu0 %v1709_v26 }
 0x2b6   :  { %v382_v19 = vmax.f32 %v366_v12, 0.0  ;;  %872 = vperm.xlu0 %1647, %v1776_v0   ;;  %1650 = vset.pattern.permute.xlu1 %v1709_v26 }
 0x2b7   :  { %864 = vperm.xlu1 %1650, %v1804_v10  }
 0x2b8   :  { %v387_v21 = vpack.c.bf16 %v383_v20, %v382_v19 }
 0x2ba   :  { %876 = vperm.xlu0 %1647, %v1797_v8  }
 0x2bb   :  { %1575 = vmatmul.mubr.msk.bf16.vlgmr.msra.gmra.mxu1 %vm80_vm0, %v558_v53  ;;  %868 = vperm.xlu1 %1650, %v1815_v13  }
 0x2bc   :  { %1580 = vmatprep.mubr.msk.bf16.mxu1 %vm1707_vm2, %v1706_v35 }
 0x2be   :  { %1649 = vset.pattern.permute.xlu0 %v1708_v25 }
 0x2bf   :  { %896 = vperm.xlu0 %1649, %v1797_v8   ;;  %1651 = vset.pattern.permute.xlu1 %v1708_v25 }
 0x2c0   :  { %888 = vperm.xlu1 %1651, %v1815_v13  }
 0x2c3   :  { %884 = vperm.xlu0 %1649, %v1804_v10  }
 0x2c4   :  { %1653 = vset.pattern.permute.xlu1 %v1705_v2 }
 0x2c7   :  { %1652 = vset.pattern.permute.xlu0 %v1705_v2  ;;  %v71_v2 = vld [vmem:[%s2130_s7 + $0xd8] sm:$0xff] }
 0x2c8   :  { %950 = vperm.xlu1 %1653, %v71_v2   ;;  %945 = vperm.xlu0 %1652, %v70_v34  }
 0x373   :  { %v514_v41 = vpop.f32.mrf.mxu1 }
 0x375   :  { %v1570_v54 = vpop.f32.mrf.mxu1 }
 0x377   :  { %v517_v55 = vpop.f32.mrf.mxu1 }
 0x378   :  { %v525_v17 = vpack.c.bf16 %v517_v55, %v514_v41 }
 0x379   :  { %v1571_v56 = vpop.f32.mrf.mxu1 }
 0x37a   :  { %v810_v56 = vpop.permute.xlu0 %809 }
 0x37b   :  { %v596_v57 = vpop.f32.mrf.mxu1 }
 0x37c   :  { %v603_v58 = vmul.f32 0.25, %v596_v57 }
 0x37d   :  { %v1576_v59 = vpop.f32.mrf.mxu1 }
 0x37e   :  { %v605_v61 = vmax.f32 %v603_v58, 0.0  ;;  %v815_v11 = vpop.permute.xlu0 %814 }
 0x37f   :  { %v599_v60 = vpop.f32.mrf.mxu1 }
 0x380   :  { %v604_v62 = vmul.f32 0.25, %v599_v60  ;;  %v607_v4 = vmul.f32 %v605_v61, %v388_v36  ;;  %v68_v36 = vld [vmem:[%s2130_s7 + $0xc0] sm:$0xff] }
 0x381   :  { %v1577_v63 = vpop.f32.mrf.mxu1  ;;  %935 = vperm.xlu1 %1653, %v68_v36  }
 0x382   :  { %v606_v1 = vmax.f32 %v604_v62, 0.0 }
 0x384   :  { %v608_v5 = vmul.f32 %v606_v1, %v389_v37  ;;  %v69_v37 = vld [vmem:[%s2130_s7 + $0xc8] sm:$0xff] }
 0x385   :  { %940 = vperm.xlu0 %1652, %v69_v37   ;;  %925 = vperm.xlu1 %1653, %v66_v38  }
 0x386   :  { %v609_v14 = vpack.c.bf16 %v608_v5, %v607_v4 }
 0x388   :  { %v614_v18 = vsel %vm80_vm0, %v609_v14, 0 }
 0x389   :  { %1579 = vmatpush3.bf16.xpose.msra.mxu1 %v614_v18  ;;  %930 = vperm.xlu0 %1652, %v67_v39  }
 0x38a   :  { %1590 = vmatprep.subr.bf16.mxu1 %v525_v17  ;;  %915 = vperm.xlu1 %1653, %v64_v40  }
 0x38d   :  { %920 = vperm.xlu0 %1652, %v65_v43  }
 0x38e   :  { %1138 = vperm.xlu1 %1653, %v60_v44  }
 0x390   :  { %1581 = vmatmul.mubr.msk.bf16.vlgmr.msra.gmra.mxu1 %vm80_vm0, %v387_v21 }
 0x391   :  { %1591 = vmatpush3.bf16.msra.mxu1 %v525_v17  ;;  %1592 = vmatprep.mubr.msk.bf16.mxu1 %vm80_vm0, %v1667_v22 }
 0x392   :  { %1143 = vperm.xlu0 %1652, %v61_v45   ;;  %1148 = vperm.xlu1 %1653, %v62_v46  }
 0x396   :  { %1153 = vperm.xlu0 %1652, %v63_v47  }
 0x398   :  { %1593 = vmatmul.mubr.msk.bf16.vlgmr.msra.gmra.mxu1 %vm80_vm0, %v1669_v23 }
 0x450   :  { %v650_v27 = vpop.f32.mrf.mxu1 }
 0x452   :  { %v1582_v28 = vpop.f32.mrf.mxu1 }
 0x454   :  { %v653_v29 = vpop.f32.mrf.mxu1 }
 0x455   :  { %v662_v30 = vpack.c.bf16 %v653_v29, %v650_v27 }
 0x456   :  { %v1583_v31 = vpop.f32.mrf.mxu1 }
 0x457   :  { %1584 = vmatprep.subr.bf16.mxu0 %v662_v30 }
 0x458   :  { %1585 = vmatpush3.bf16.msra.mxu0 %v662_v30  ;;  %v1594_v49 = vpop.f32.mrf.mxu1 }
 0x45a   :  { %v778_v50 = vpop.f32.mrf.mxu1 }
 0x45b   :  { %1587 = vmatmul.mubr.msk.bf16.vlgmr.msra.gmra.mxu0 %vm80_vm0, %v1668_v32 }
 0x45c   :  { %1600 = vmatprep.mubr.msk.bf16.mxu0 %vm272_vm1, %v1670_v33  ;;  %v1595_v53 = vpop.f32.mrf.mxu1 }
 0x45e   :  { %v781_v60 = vpop.f32.mrf.mxu1 }
 0x51b   :  { %v1588_v52 = vpop.f32.mrf.mxu0 }
 0x51c   :  { %v787_v41 = vadd.f32 %v1594_v49, %v1588_v52  ;;  %v893_v49 = vpop.permute.xlu1 %892 }
 0x51d   :  { %v713_v42 = vpop.f32.mrf.mxu0 }
 0x51e   :  { %v779_v54 = vadd.f32 %v778_v50, %v713_v42  ;;  %v795_v61 = vadd.f32 %v787_v41, %v1799_v9  ;;  %v873_v50 = vpop.permute.xlu0 %872 }
 0x51f   :  { %v1589_v55 = vpop.f32.mrf.mxu0 }
 0x520   :  { %v793_v57 = vadd.f32 %v779_v54, %v1790_v6  ;;  %v790_v58 = vadd.f32 %v1595_v53, %v1589_v55  ;;  %v2015_v4 = vadd.f32 %v810_v56, %v795_v61  ;;  %v865_v52 = vpop.permute.xlu1 %864 }
 0x521   :  { %v716_v59 = vpop.f32.mrf.mxu0 }
 0x522   :  { %v782_v62 = vadd.f32 %v781_v60, %v716_v59  ;;  %v2011_v63 = vadd.f32 %v800_v48, %v793_v57  ;;  %v796_v1 = vadd.f32 %v790_v58, %v1823_v15  ;;  %v824_v16 = vsel %vm80_vm0, %v2015_v4, 0.0  ;;  %v877_v42 = vpop.permute.xlu0 %876 }
 0x524   :  { %v794_v3 = vadd.f32 %v782_v62, %v1792_v7  ;;  %v821_v6 = vsel %vm80_vm0, %v2011_v63, 0.0  ;;  %v2021_v12 = vadd.f32 %v815_v11, %v796_v1  ;;  %v869_v53 = vpop.permute.xlu1 %868 }
 0x526   :  { %v2017_v5 = vadd.f32 %v805_v51, %v794_v3  ;;  %v826_v7 = vsel %vm80_vm0, %v2021_v12, 0.0  ;;  %v897_v41 = vpop.permute.xlu0 %896 }
 0x528   :  { %v822_v9 = vsel %vm80_vm0, %v2017_v5, 0.0  ;;  %v889_v59 = vpop.permute.xlu1 %888 }
 0x529   :  { %v823_v14 = vadd.f32 %v822_v9, %v821_v6 }
 0x52a   :  { %v885_v60 = vpop.permute.xlu0 %884 }
 0x52b   :  { %v825_v15 = vadd.f32 %v824_v16, %v823_v14 }
 0x52d   :  { %v827_v17 = vadd.f32 %v826_v7, %v825_v15  ;;  %v1671_v7 = vld [vmem:[%s2128_s5 + $0x8] sm:$0xff]  }
 0x52f   :  { %v828_v18 = vrot.slane %v827_v17, 4 }
 0x531   :  { %v829_v19 = vadd.f32 %v828_v18, %v827_v17  ;;  %v1672_v17 = vld [vmem:[%s2128_s5 + $0x10] sm:$0xff]   ;;  %v1673_v18 = vld [vmem:[%s2128_s5 + $0x18] sm:$0xff]  }
 0x533   :  { %v830_v20 = vrot.slane %v829_v19, 2 }
 0x535   :  { %v831_v21 = vadd.f32 %v830_v20, %v829_v19  ;;  %v1674_v19 = vld [vmem:[%s2129_s6] sm:$0xff]   ;;  %v1710_v20 = vmov 4  }
 0x536   :  { %1616 = vmatprep.mubr.msk.bf16.mxu1 %vm1076_vm3, %v1674_v19  ;;  %1654 = vset.pattern.permute.xlu1 %v1710_v20 }
 0x537   :  { %v832_v22 = vrot.slane %v831_v21, 1  ;;  %1219 = vperm.xlu1 %1654, %v1797_v8  }
 0x539   :  { %v833_v23 = vadd.f32 %v832_v22, %v831_v21  ;;  %v1711_v21 = vmov 5   ;;  %v951_v22 = vpop.permute.xlu1 %950 }
 0x53a   :  { %1655 = vset.pattern.permute.xlu0 %v1711_v21 }
 0x53b   :  { %v834_v24 = vmul.f32 0.03125, %v833_v23  ;;  %1239 = vperm.xlu0 %1655, %v1797_v8   ;;  %1215 = vperm.xlu1 %1654, %v1776_v0  }
 0x53d   :  { %v836_v25 = vsub.f32 %v2017_v5, %v834_v24  ;;  %v838_v26 = vsub.f32 %v2021_v12, %v834_v24  ;;  %v835_v27 = vsub.f32 %v2011_v63, %v834_v24  ;;  %v837_v28 = vsub.f32 %v2015_v4, %v834_v24  ;;  %v946_v24 = vpop.permute.xlu0 %945 }
 0x53f   :  { %v840_v29 = vmul.f32 %v836_v25, %v836_v25  ;;  %v839_v30 = vmul.f32 %v835_v27, %v835_v27  ;;  %v841_v31 = vmul.f32 %v837_v28, %v837_v28  ;;  %v842_v32 = vmul.f32 %v838_v26, %v838_v26  ;;  %1657 = vset.pattern.permute.xlu0 %v1710_v20 }
 0x540   :  { %1211 = vperm.xlu0 %1657, %v1815_v13   ;;  %1656 = vset.pattern.permute.xlu1 %v1711_v21 }
 0x541   :  { %v843_v33 = vsel %vm80_vm0, %v839_v30, 0.0  ;;  %v844_v2 = vsel %vm80_vm0, %v840_v29, 0.0  ;;  %v846_v36 = vsel %vm80_vm0, %v841_v31, 0.0  ;;  %v848_v38 = vsel %vm80_vm0, %v842_v32, 0.0  ;;  %1235 = vperm.xlu1 %1656, %v1776_v0  }
 0x542   :  { %v845_v34 = vadd.f32 %v844_v2, %v843_v33 }
 0x544   :  { %v847_v37 = vadd.f32 %v846_v36, %v845_v34  ;;  %1659 = vset.pattern.permute.xlu0 %v1711_v21 }
 0x545   :  { %1227 = vperm.xlu0 %1659, %v1804_v10   ;;  %1231 = vperm.xlu1 %1656, %v1815_v13  }
 0x546   :  { %v849_v39 = vadd.f32 %v848_v38, %v847_v37 }
 0x548   :  { %v850_v40 = vrot.slane %v849_v39, 4 }
 0x549   :  { %1658 = vset.pattern.permute.xlu1 %v1710_v20 }
 0x54a   :  { %v851_v43 = vadd.f32 %v850_v40, %v849_v39  ;;  %1207 = vperm.xlu1 %1658, %v1804_v10  }
 0x54c   :  { %v852_v44 = vrot.slane %v851_v43, 2 }
 0x54e   :  { %v853_v45 = vadd.f32 %v852_v44, %v851_v43 }
 0x550   :  { %v854_v46 = vrot.slane %v853_v45, 1 }
 0x552   :  { %v855_v47 = vadd.f32 %v854_v46, %v853_v45 }
 0x554   :  { %v856_v48 = vmul.f32 0.03125, %v855_v47 }
 0x556   :  { %v857_v51 = vadd.f32 1e-05, %v856_v48 }
 0x558   :  { %1678 = vrsqrt.f32 %v857_v51 }
 0x565   :  { %v1679_v54 = vpop.eup %1678 }
 0x566   :  { %v861_v55 = vmul.f32 %v1679_v54, %v837_v28  ;;  %v859_v56 = vmul.f32 %v1679_v54, %v835_v27  ;;  %v862_v57 = vmul.f32 %v1679_v54, %v838_v26  ;;  %v860_v58 = vmul.f32 %v1679_v54, %v836_v25  ;;  %v936_v26 = vpop.permute.xlu1 %935  ;;  %v941_v28 = vpop.permute.xlu0 %940  ;;  %v1675_v54 = vld [vmem:[%s2129_s6 + $0x8] sm:$0xff]  }
 0x568   :  { %v881_v61 = vmul.f32 %v873_v50, %v861_v55  ;;  %v879_v62 = vmul.f32 %v865_v52, %v859_v56  ;;  %v882_v1 = vmul.f32 %v877_v42, %v862_v57  ;;  %v880_v3 = vmul.f32 %v869_v53, %v860_v58  ;;  %v1343_v55 = vld [vmem:[%s2132_s9 + $0x38] sm:$0xff]  ;;  %v1342_v56 = vld [vmem:[%s2132_s9 + $0x30] sm:$0xff]  ;;  %v1341_v57 = vld [vmem:[%s2132_s9 + $0x28] sm:$0xff] }
 0x569   :  { %v1340_v58 = vld [vmem:[%s2132_s9 + $0x20] sm:$0xff] }
 0x56a   :  { %v901_v11 = vadd.f32 %v893_v49, %v881_v61  ;;  %v902_v6 = vadd.f32 %v897_v41, %v882_v1  ;;  %v900_v9 = vadd.f32 %v889_v59, %v880_v3  ;;  %v899_v14 = vadd.f32 %v885_v60, %v879_v62  ;;  %v926_v0 = vpop.permute.xlu1 %925  ;;  %v931_v33 = vpop.permute.xlu0 %930  ;;  %v1339_v59 = vld [vmem:[%s2132_s9 + $0x18] sm:$0xff]  ;;  %v1338_v60 = vld [vmem:[%s2132_s9 + $0x10] sm:$0xff]  ;;  %v1337_v61 = vld [vmem:[%s2132_s9 + $0x8] sm:$0xff] }
 0x56c   :  { %v912_v16 = vpack.c.bf16 %v902_v6, %v901_v11  ;;  %v911_v15 = vpack.c.bf16 %v900_v9, %v899_v14 }
 0x56e   :  { %1596 = vmatprep.subr.bf16.mxu0 %v912_v16  ;;  %v916_v45 = vpop.permute.xlu1 %915  ;;  %v921_v46 = vpop.permute.xlu0 %920 }
 0x56f   :  { %1597 = vmatpush3.bf16.msra.mxu0 %v912_v16 }
 0x570   :  { %1598 = vmatprep.subr.bf16.mxu0 %v911_v15 }
 0x572   :  { %v1139_v62 = vpop.permute.xlu1 %1138  ;;  %v1144_v3 = vpop.permute.xlu0 %1143 }
 0x573   :  { %1599 = vmatpush3.bf16.msra.mxu0 %v911_v15 }
 0x574   :  { %1620 = vmatprep.subr.mxu0 %v1706_v35 }
 0x576   :  { %1601 = vmatmul.mubr.msk.bf16.vlgmr.msra.gmra.mxu0 %vm272_vm1, %v1671_v7  ;;  %v1149_v7 = vpop.permute.xlu1 %1148  ;;  %v1154_v20 = vpop.permute.xlu0 %1153 }
 0x577   :  { %1604 = vmatprep.mubr.msk.bf16.mxu0 %vm272_vm1, %v1672_v17 }
 0x57e   :  { %1605 = vmatmul.mubr.msk.bf16.gmra.mxu0 %vm272_vm1, %v1673_v18 }
 0x57f   :  { %1628 = vmatprep.mubr.msk.f32.mxu0 %vm1707_vm2, %v1706_v35 }
 0x636   :  { %v1602_v23 = vpop.f32.mrf.mxu0 }
 0x637   :  { %v1028_v43 = vadd.f32 %v1602_v23, %v926_v0 }
 0x638   :  { %v1019_v8 = vpop.f32.mrf.mxu0 }
 0x639   :  { %v1052_v50 = vmax.f32 %v1028_v43, 0.0  ;;  %v1020_v51 = vadd.f32 %v1019_v8, %v916_v45 }
 0x63a   :  { %v1603_v25 = vpop.f32.mrf.mxu0 }
 0x63b   :  { %v1031_v38 = vadd.f32 %v1603_v25, %v931_v33  ;;  %v1050_v53 = vmax.f32 %v1020_v51, 0.0 }
 0x63c   :  { %v1022_v27 = vpop.f32.mrf.mxu0 }
 0x63d   :  { %v1053_v48 = vmax.f32 %v1031_v38, 0.0  ;;  %v1023_v49 = vadd.f32 %v1022_v27, %v921_v46 }
 0x63e   :  { %v1606_v29 = vpop.f32.mrf.mxu0 }
 0x63f   :  { %v1044_v31 = vadd.f32 %v1606_v29, %v946_v24  ;;  %v1063_v52 = vpack.c.bf16 %v1053_v48, %v1052_v50  ;;  %v1051_v42 = vmax.f32 %v1023_v49, 0.0 }
 0x640   :  { %v1035_v30 = vpop.f32.mrf.mxu0 }
 0x641   :  { %v1036_v2 = vadd.f32 %v1035_v30, %v936_v26  ;;  %v1056_v36 = vmax.f32 %v1044_v31, 0.0  ;;  %v1062_v41 = vpack.c.bf16 %v1051_v42, %v1050_v53 }
 0x642   :  { %v1607_v32 = vpop.f32.mrf.mxu0 }
 0x643   :  { %v1047_v34 = vadd.f32 %v1607_v32, %v951_v22  ;;  %v1054_v39 = vmax.f32 %v1036_v2, 0.0 }
 0x644   :  { %v1038_v13 = vpop.f32.mrf.mxu0 }
 0x645   :  { %v1057_v37 = vmax.f32 %v1047_v34, 0.0  ;;  %v1039_v10 = vadd.f32 %v1038_v13, %v941_v28 }
 0x647   :  { %v1065_v40 = vpack.c.bf16 %v1057_v37, %v1056_v36  ;;  %v1055_v44 = vmax.f32 %v1039_v10, 0.0 }
 0x649   :  { %v1064_v47 = vpack.c.bf16 %v1055_v44, %v1054_v39  ;;  %1608 = vmatprep.subr.bf16.mxu1 %v1065_v40 }
 0x64a   :  { %1609 = vmatpush3.bf16.msra.mxu1 %v1065_v40 }
 0x64b   :  { %1610 = vmatprep.subr.bf16.mxu1 %v1064_v47 }
 0x64e   :  { %1611 = vmatpush3.bf16.msra.mxu1 %v1064_v47 }
 0x64f   :  { %1612 = vmatprep.subr.bf16.mxu1 %v1063_v52 }
 0x652   :  { %1613 = vmatpush3.bf16.msra.mxu1 %v1063_v52 }
 0x653   :  { %1614 = vmatprep.subr.bf16.mxu1 %v1062_v41 }
 0x656   :  { %1615 = vmatpush3.bf16.msra.mxu1 %v1062_v41 }
 0x657   :  { %1383 = vmatprep.subr.mxu1 %v1343_v55  ;;  %v1220_v55 = vpop.permute.xlu1 %1219 }
 0x659   :  { %1617 = vmatmul.mubr.msk.bf16.vlgmr.msra.gmra.mxu1 %vm1076_vm3, %v1675_v54 }
 0x65a   :  { %1423 = vmatprep.mubr.f32.mxu1 %v1706_v35  ;;  %1384 = vmatpush1.msra.mxu1 %v1342_v56 }
 0x65b   :  { %1385 = vmatprep.subr.mxu1 %v1341_v57  ;;  %v1216_v57 = vpop.permute.xlu1 %1215 }
 0x65c   :  { %1386 = vmatpush1.msra.mxu1 %v1340_v58 }
 0x65d   :  { %1387 = vmatprep.subr.mxu1 %v1339_v59 }
 0x65e   :  { %1388 = vmatpush1.msra.mxu1 %v1338_v60  ;;  %v1240_v60 = vpop.permute.xlu0 %1239 }
 0x65f   :  { %1389 = vmatprep.subr.mxu1 %v1337_v61  ;;  %v1236_v58 = vpop.permute.xlu1 %1235 }
 0x719   :  { %v1618_v1 = vpop.f32.mrf.mxu1 }
 0x71a   :  { %v1134_v6 = vadd.f32 %v1618_v1, %v2015_v4  ;;  %v1232_v1 = vpop.permute.xlu1 %1231 }
 0x71b   :  { %v1117_v11 = vpop.f32.mrf.mxu1 }
 0x71c   :  { %v1132_v9 = vadd.f32 %v1117_v11, %v2011_v63  ;;  %v1158_v18 = vadd.f32 %v1149_v7, %v1134_v6 }
 0x71d   :  { %v1619_v14 = vpop.f32.mrf.mxu1 }
 0x71e   :  { %v1156_v16 = vadd.f32 %v1139_v62, %v1132_v9  ;;  %v1135_v15 = vadd.f32 %v1619_v14, %v2021_v12  ;;  %v1162_v24 = vmax.f32 %v1158_v18, 0.0  ;;  %v1212_v14 = vpop.permute.xlu0 %1211  ;;  %v1208_v18 = vpop.permute.xlu1 %1207 }
 0x71f   :  { %v1120_v17 = vpop.f32.mrf.mxu1 }
 0x720   :  { %v1133_v19 = vadd.f32 %v1120_v17, %v2017_v5  ;;  %v1160_v21 = vmax.f32 %v1156_v16, 0.0  ;;  %v1159_v22 = vadd.f32 %v1154_v20, %v1135_v15  ;;  %v1167_v27 = vsel %vm80_vm0, %v1162_v24, 0.0 }
 0x722   :  { %v1157_v23 = vadd.f32 %v1144_v3, %v1133_v19  ;;  %v1164_v25 = vsel %vm80_vm0, %v1160_v21, 0.0  ;;  %v1163_v4 = vmax.f32 %v1159_v22, 0.0  ;;  %v1228_v22 = vpop.permute.xlu0 %1227 }
 0x724   :  { %v1161_v8 = vmax.f32 %v1157_v23, 0.0  ;;  %v1169_v28 = vsel %vm80_vm0, %v1163_v4, 0.0 }
 0x726   :  { %v1165_v63 = vsel %vm80_vm0, %v1161_v8, 0.0 }
 0x727   :  { %v1166_v26 = vadd.f32 %v1165_v63, %v1164_v25  ;;  %v1250_v25 = vld [vmem:[%s2125_s2] sm:$0x3]  ;;  %s1712_s2 = smov [#allocation2]  }
 0x729   :  { %v1168_v12 = vadd.f32 %v1167_v27, %v1166_v26  ;;  %v1346_v27 = vlaneseq }
 0x72b   :  { %v1170_v29 = vadd.f32 %v1169_v28, %v1168_v12  ;;  %v1344_v28 = vld [vmem:[%s2133_s10] sm:$0x3] }
 0x72d   :  { %v1171_v30 = vrot.slane %v1170_v29, 4 }
 0x72f   :  { %v1172_v5 = vadd.f32 %v1171_v30, %v1170_v29 }
 0x731   :  { %v1173_v31 = vrot.slane %v1172_v5, 2 }
 0x733   :  { %v1174_v0 = vadd.f32 %v1173_v31, %v1172_v5 }
 0x735   :  { %v1175_v32 = vrot.slane %v1174_v0, 1 }
 0x737   :  { %v1176_v33 = vadd.f32 %v1175_v32, %v1174_v0 }
 0x739   :  { %v1177_v2 = vmul.f32 0.03125, %v1176_v33 }
 0x73b   :  { %v1178_v34 = vsub.f32 %v1160_v21, %v1177_v2  ;;  %v1179_v13 = vsub.f32 %v1161_v8, %v1177_v2  ;;  %v1180_v36 = vsub.f32 %v1162_v24, %v1177_v2  ;;  %v1181_v37 = vsub.f32 %v1163_v4, %v1177_v2  ;;  %v1336_v4 = vld [vmem:[%s2132_s9] sm:$0xff]  ;;  %s1450_s9 = sshll.u32 %s1712_s2, 4  ;;  %s1451_s9 = int_to_ptr.vmem [resolvable:$true] %s1450_s9 }
 0x73c   :  { %1390 = vmatpush1.msra.mxu1 %v1336_v4  ;;  %s1682_s27 = scalar_lea.vmem %s1451_s9, 64  ;;  %p1687_p1 = scmp.lt.s32.totalorder %s1451_s9, %s1451_s9 }
 0x73d   :  { %v1182_v10 = vmul.f32 %v1178_v34, %v1178_v34  ;;  %v1183_v38 = vmul.f32 %v1179_v13, %v1179_v13  ;;  %v1184_v39 = vmul.f32 %v1180_v36, %v1180_v36  ;;  %v1185_v44 = vmul.f32 %v1181_v37, %v1181_v37  ;;  %p1683_p0 = scmp.ne.s32.totalorder %s1451_s9, %s1682_s27  ;;  %p1688_p2 = scmp.lt.s32.totalorder %s1682_s27, %s1682_s27 }
 0x73f   :  { %v1186_v40 = vsel %vm80_vm0, %v1182_v10, 0.0  ;;  %v1187_v43 = vsel %vm80_vm0, %v1183_v38, 0.0  ;;  %v1189_v46 = vsel %vm80_vm0, %v1184_v39, 0.0  ;;  %v1191_v48 = vsel %vm80_vm0, %v1185_v44, 0.0  ;;  %p1689_p3 = por %p1688_p2, %p1687_p1 }
 0x740   :  { %v1188_v45 = vadd.f32 %v1187_v43, %v1186_v40 }
 0x741   :  { %p1690_p4 = pnand %p1689_p3, %p1683_p0 }
 0x742   :  { %v1190_v47 = vadd.f32 %v1189_v46, %v1188_v45 }
 0x744   :  { %v1192_v49 = vadd.f32 %v1191_v48, %v1190_v47 }
 0x746   :  { %v1193_v50 = vrot.slane %v1192_v49, 4 }
 0x748   :  { %v1194_v51 = vadd.f32 %v1193_v50, %v1192_v49 }
 0x74a   :  { %v1195_v52 = vrot.slane %v1194_v51, 2 }
 0x74c   :  { %v1196_v42 = vadd.f32 %v1195_v52, %v1194_v51 }
 0x74e   :  { %v1197_v53 = vrot.slane %v1196_v42, 1 }
 0x750   :  { %v1198_v41 = vadd.f32 %v1197_v53, %v1196_v42 }
 0x752   :  { %v1199_v54 = vmul.f32 0.03125, %v1198_v41 }
 0x754   :  { %v1200_v56 = vadd.f32 1e-05, %v1199_v54 }
 0x756   :  { %1680 = vrsqrt.f32 %v1200_v56 }
 0x763   :  { %v1681_v59 = vpop.eup %1680 }
 0x764   :  { %v1205_v61 = vmul.f32 %v1681_v59, %v1181_v37  ;;  %v1204_v62 = vmul.f32 %v1681_v59, %v1180_v36  ;;  %v1203_v6 = vmul.f32 %v1681_v59, %v1179_v13  ;;  %v1202_v17 = vmul.f32 %v1681_v59, %v1178_v34 }
 0x766   :  { %v1225_v3 = vmul.f32 %v1220_v55, %v1205_v61  ;;  %v1224_v11 = vmul.f32 %v1216_v57, %v1204_v62  ;;  %v1223_v7 = vmul.f32 %v1212_v14, %v1203_v6  ;;  %v1222_v21 = vmul.f32 %v1208_v18, %v1202_v17 }
 0x768   :  { %v1245_v9 = vadd.f32 %v1240_v60, %v1225_v3  ;;  %v1244_v16 = vadd.f32 %v1236_v58, %v1224_v11  ;;  %v1243_v20 = vadd.f32 %v1232_v1, %v1223_v7  ;;  %v1242_v24 = vadd.f32 %v1228_v22, %v1222_v21 }
 0x76a   :  { %v1249_v15 = vmax.f32 %v1245_v9, 0.0  ;;  %v1248_v19 = vmax.f32 %v1244_v16, 0.0  ;;  %v1247_v23 = vmax.f32 %v1243_v20, 0.0  ;;  %v1246_v8 = vmax.f32 %v1242_v24, 0.0 }
 0x76c   :  { %1621 = vmatpush3.xpose.msk.msra.mxu0 %vm80_vm0, %v1249_v15 }
 0x76d   :  { %1622 = vmatprep.subr.mxu0 %v1706_v35 }
 0x770   :  { %1623 = vmatpush3.xpose.msk.msra.mxu0 %vm80_vm0, %v1248_v19 }
 0x771   :  { %1624 = vmatprep.subr.mxu0 %v1706_v35 }
 0x774   :  { %1625 = vmatpush3.xpose.msk.msra.mxu0 %vm80_vm0, %v1247_v23 }
 0x775   :  { %1626 = vmatprep.subr.mxu0 %v1706_v35  ;;  %v1347_v35 = vshrl.u32 %v1346_v27, 7 }
 0x777   :  { %v1348_v12 = vsub.s32 0, %v1347_v35  ;;  %v1352_v29 = vsub.s32 1, %v1347_v35 }
 0x778   :  { %1627 = vmatpush3.xpose.msk.msra.mxu0 %vm80_vm0, %v1246_v8 }
 0x779   :  { %v1349_v30 = vrot.slane %v1344_v28, %v1348_v12  ;;  %v1353_v5 = vrot.slane %v1344_v28, %v1352_v29 }
 0x77b   :  { %1629 = vmatmul.mubr.msk.f32.vlgmr.msra.gmra.mxu0 %vm80_vm0, %v1250_v25 }
 0x83b   :  { %v1332_v63 = vpop.f32.mrf.mxu0 }
 0x83c   :  { %1503 = vmatmul.mubr.msk.f32.vlgmr.msra.gmra.mxu1 %vm272_vm1, %v1332_v63 }
 0x83d   :  { %v1630_v26 = vpop.f32.mrf.mxu0 }
 0x8fc   :  { %v1425_v31 = vpop.f32.mrf.mxu1 }
 0x8fd   :  { %v1426_v0 = vadd.f32 %v1425_v31, %v1349_v30 }
 0x8fe   :  { %v1427_v32 = vpop.f32.mrf.mxu1 }
 0x8ff   :  { %v1428_v33 = vadd.f32 %v1427_v32, %v1353_v5  ;;  %v1430_v2 = vmax.f32 %v1426_v0, 0.0 }
 0x901   :  { %v1431_v34 = vmax.f32 %v1428_v33, 0.0 }
 0x903   :  { %v1434_v13 = vcombine.low %v1430_v2, %v1431_v34 }
 0x905   :  { %1504 = vst.sshfl [vmem:[#allocation2] sm:$0x33 pattern:$0x76325410] %v1434_v13 }
 0x906   :  { %1693 = shalt.err (!%p1690_p4)
}
 0x907   :  { %1453 = dma.vmem_to_hbm [thread:$0]  %s1451_s9, 64, %s2134_s11, [#allocation3]  }
 0x908   :  { %1702 = dma.done.wait [#allocation3], 64  }
 0x909   :  { %1703 = vsyncadd [#allocation3], 4294967232 }
 0x90a   :  { %1457 = vsyncpa [#allocation3], 1 }

</bundles_post_ra>
